<compile_context>
chip_gen: v7x
topology: tpu7x:2x2x1
jax: 0.10.0
libtpu: 0.0.40
codegen_flags: <defaults>
</compile_context>

<pallas_src>
import jax
import jax.numpy as jnp
from jax.experimental import pallas as pl
from jax.experimental.pallas import tpu as pltpu


# ------------------------------ Pallas kernels -------------------------------

def _linear_kernel(x_ref, wt_ref, b_ref, o_ref):
    # y = x @ W^T + b   (W pre-transposed to (K, N))
    o_ref[...] = (
        jnp.dot(x_ref[...], wt_ref[...], preferred_element_type=jnp.float32)
        + b_ref[...]
    )


def _decode_step_kernel(tok_ref,                       # SMEM (T, B) int32
                        emb_ref, sinit_ref, wih_ref, whh_ref, blstm_ref,
                        enc2_ref, enc_ref, wol_ref, bol_ref,
                        wout_ref, bout_ref,
                        logits_ref, sout_ref,
                        state_sc, outf_sc, emb_sc):
    """Fused decode: grid=(T, NV).  State update at v==0; vocab tile every v."""
    t = pl.program_id(0)
    v = pl.program_id(1)
    B, E = emb_sc.shape
    H = whh_ref.shape[0]
    D2 = enc_ref.shape[2]                              # 2*H (bidirectional)

    @pl.when(v == 0)
    def _state_update():
        @pl.when(t == 0)
        def _init():
            state_sc[...] = sinit_ref[...]             # packed [h0 | c0 | ctx0]

        h0 = state_sc[:, 0:H]
        c0 = state_sc[:, H:2 * H]
        pctx = state_sc[:, 2 * H:2 * H + D2]

        # ---- embedding(output): B dynamic row reads from the resident table.
        # Token ids assumed in [0, V) (dynamic VMEM indexing is unchecked).
        for b in range(B):
            tok = tok_ref[t, b]
            emb_sc[pl.ds(b, 1), :] = emb_ref[tok]      # (1, E) row gather
        embedded = emb_sc[...]                         # (B, E)

        # ---- LSTM cell on cat(embedded, prev_context); concat avoided by
        # row-splitting W_ih (PyTorch gate order i, f, g, o).
        gates = (
            jnp.dot(embedded, wih_ref[0:E, :],
                    preferred_element_type=jnp.float32)
            + jnp.dot(pctx, wih_ref[E:E + D2, :],
                      preferred_element_type=jnp.float32)
            + jnp.dot(h0, whh_ref[...], preferred_element_type=jnp.float32)
            + blstm_ref[...]
        )                                              # (B, 4H)
        i_g = jax.nn.sigmoid(gates[:, 0:H])
        f_g = jax.nn.sigmoid(gates[:, H:2 * H])
        g_g = jnp.tanh(gates[:, 2 * H:3 * H])
        o_g = jax.nn.sigmoid(gates[:, 3 * H:4 * H])
        c1 = f_g * c0 + i_g * g_g
        h1 = o_g * jnp.tanh(c1)

        # ---- 'general' attention via batched MXU matmuls (no XLU
        # broadcast-reduce, no (B,S,D2) temporaries).
        scores = jnp.einsum("bqh,bsh->bqs", h1[:, None, :], enc2_ref[...],
                            preferred_element_type=jnp.float32)[:, 0, :]
        m = jnp.max(scores, axis=-1, keepdims=True)
        ex = jnp.exp(scores - m)
        w = ex / jnp.sum(ex, axis=-1, keepdims=True)   # exact softmax
        ctx = jnp.einsum("bqs,bsd->bqd", w[:, None, :], enc_ref[...],
                         preferred_element_type=jnp.float32)[:, 0, :]

        # ---- output_final = tanh(output_linear(cat(h1, ctx))); concat avoided
        out_pre = (
            jnp.dot(h1, wol_ref[0:H, :], preferred_element_type=jnp.float32)
            + jnp.dot(ctx, wol_ref[H:H + D2, :],
                      preferred_element_type=jnp.float32)
            + bol_ref[...]
        )
        outf_sc[...] = jnp.tanh(out_pre)               # dropout=identity (eval)

        # persist recurrent state in the packed lane-dense slab
        state_sc[:, 0:H] = h1
        state_sc[:, H:2 * H] = c1
        state_sc[:, 2 * H:2 * H + D2] = ctx

        @pl.when(t == pl.num_programs(0) - 1)
        def _final_state():
            sout_ref[...] = state_sc[...]

    # ---- vocab projection tile (every (t, v)): bf16 operands, f32 accumulate,
    # lane-dense (TV multiple of 128) logits store.
    logits_ref[0] = (
        jnp.dot(outf_sc[...].astype(jnp.bfloat16), wout_ref[...],
                preferred_element_type=jnp.float32)
        + bout_ref[...]
    )


# ------------------------- parameter / encoder prep --------------------------

def prepare_params(p):
    """Pre-transpose weights / pre-sum biases ONCE (not per decode step)."""
    V, E = p["embedding"].shape
    return {
        "embedding3": p["embedding"].reshape(V, 1, E),       # (V, 1, E) gatherable
        "wih_t": p["lstm_w_ih"].T,                           # (E+2H, 4H)
        "whh_t": p["lstm_w_hh"].T,                           # (H, 4H)
        "b_lstm": (p["lstm_b_ih"] + p["lstm_b_hh"]).reshape(1, -1),
        "attn_wt": p["attn_w"].T,                            # (2H, H)
        "attn_b": p["attn_b"].reshape(1, -1),
        "outlin_t": p["outlin_w"].T,                         # (3H, H)
        "outlin_b": p["outlin_b"].reshape(1, -1),
        "out_t": p["out_w"].T.astype(jnp.bfloat16),          # (H, V) bf16
        "out_b": p["out_b"].reshape(1, -1),
    }


def _nbytes(x):
    return int(x.size) * x.dtype.itemsize


def prepare_encoder(params_t, encoder_outputs):
    """Once-per-sequence work hoisted out of the decode loop:
    batch-first layout + enc2 = attention_layer(encoder_outputs)."""
    S, B, D2 = encoder_outputs.shape
    H = params_t["attn_wt"].shape[1]
    enc_bsd = jnp.transpose(encoder_outputs, (1, 0, 2))      # (B, S, D2)
    rows = B * S
    rt = min(rows, 512)
    assert rows % rt == 0
    x = enc_bsd.reshape(rows, D2)
    ce = pl.CostEstimate(flops=2 * rows * D2 * H, transcendentals=0,
                         bytes_accessed=_nbytes(x)
                         + _nbytes(params_t["attn_wt"]) + 4 * rows * H)
    enc2_flat = pl.pallas_call(
        _linear_kernel,
        out_shape=jax.ShapeDtypeStruct((rows, H), jnp.float32),
        grid=(rows // rt,),
        in_specs=[pl.BlockSpec((rt, D2), lambda i: (i, 0)),
                  pl.BlockSpec((D2, H), lambda i: (0, 0)),
                  pl.BlockSpec((1, H), lambda i: (0, 0))],
        out_specs=pl.BlockSpec((rt, H), lambda i: (i, 0)),
        compiler_params=pltpu.CompilerParams(
            dimension_semantics=("parallel",)),
        cost_estimate=ce,
    )(x, params_t["attn_wt"], params_t["attn_b"])
    return enc_bsd, enc2_flat.reshape(B, S, H)


# --------------------------- fused decode sequence ---------------------------

def decode_sequence(params_t, enc_bsd, enc2_bsh, hidden, tokens, prev_context,
                    *, vocab_tile=128):
    """T teacher-forced DecoderRNN.forward steps in ONE pallas_call.
    Per-step semantics match the PyTorch module (attention_type='general',
    bidirectional=True, num_layers=1, eval mode)."""
    h0 = hidden[0][0]                                        # (B, H)
    c0 = hidden[1][0]                                        # (B, H)
    B, H = h0.shape
    _, S, D2 = enc_bsd.shape
    V, _, E = params_t["embedding3"].shape
    T = tokens.shape[0]

    assert D2 == 2 * H                 # bidirectional -> packed state is (B, 4H)
    TV = min(vocab_tile, V)
    assert V % TV == 0
    NV = V // TV

    state0 = jnp.concatenate([h0, c0, prev_context.reshape(B, D2)], axis=1)
    toks = tokens.reshape(T, B).astype(jnp.int32)

    flops = T * (2 * B * (E + D2 + H) * 4 * H              # LSTM gates
                 + 2 * B * S * H + 2 * B * S * D2          # attention
                 + 2 * B * 3 * H * H                       # output_linear
                 + 2 * B * H * V)                          # vocab projection
    transcendentals = T * B * (6 * H + S)
    weight_bytes = sum(_nbytes(params_t[k]) for k in
                       ("embedding3", "wih_t", "whh_t", "b_lstm",
                        "outlin_t", "outlin_b", "out_t", "out_b"))
    bytes_accessed = (weight_bytes + _nbytes(enc_bsd) + _nbytes(enc2_bsh)
                      + _nbytes(state0) + _nbytes(toks)
                      + 4 * T * B * V + 4 * B * 4 * H)

    grid_spec = pltpu.PrefetchScalarGridSpec(
        num_scalar_prefetch=1,                               # token ids -> SMEM
        grid=(T, NV),
        in_specs=[
            pl.BlockSpec((V, 1, E), lambda t, v, tok: (0, 0, 0)),     # embedding
            pl.BlockSpec((B, 4 * H), lambda t, v, tok: (0, 0)),       # init state
            pl.BlockSpec((E + D2, 4 * H), lambda t, v, tok: (0, 0)),  # W_ih^T
            pl.BlockSpec((H, 4 * H), lambda t, v, tok: (0, 0)),       # W_hh^T
            pl.BlockSpec((1, 4 * H), lambda t, v, tok: (0, 0)),       # b_ih+b_hh
            pl.BlockSpec((B, S, H), lambda t, v, tok: (0, 0, 0)),     # enc2
            pl.BlockSpec((B, S, D2), lambda t, v, tok: (0, 0, 0)),    # enc
            pl.BlockSpec((3 * H, H), lambda t, v, tok: (0, 0)),       # outlin^T
            pl.BlockSpec((1, H), lambda t, v, tok: (0, 0)),           # outlin b
            pl.BlockSpec((H, TV), lambda t, v, tok: (0, v)),          # out^T tile
            pl.BlockSpec((1, TV), lambda t, v, tok: (0, v)),          # out b tile
        ],
        out_specs=[
            pl.BlockSpec((1, B, TV), lambda t, v, tok: (t, 0, v)),    # logits
            pl.BlockSpec((B, 4 * H), lambda t, v, tok: (0, 0)),       # final state
        ],
        scratch_shapes=[
            pltpu.VMEM((B, 4 * H), jnp.float32),   # live [h | c | ctx] slab
            pltpu.VMEM((B, H), jnp.float32),       # out_final (shared by V tiles)
            pltpu.VMEM((B, E), jnp.float32),       # gathered embeddings
        ],
    )

    logits, state_f = pl.pallas_call(
        _decode_step_kernel,
        out_shape=(
            jax.ShapeDtypeStruct((T, B, V), jnp.float32),
            jax.ShapeDtypeStruct((B, 4 * H), jnp.float32),
        ),
        grid_spec=grid_spec,
        compiler_params=pltpu.CompilerParams(
            # t carries the recurrence; v sequential because the state update
            # only runs at v==0 (TODO(synk): "parallel" on v for v7x megacore
            # once the state update is replicated per core).
            dimension_semantics=("arbitrary", "arbitrary"),
            vmem_limit_bytes=32 * 1024 * 1024,
        ),
        cost_estimate=pl.CostEstimate(flops=flops,
                                      transcendentals=transcendentals,
                                      bytes_accessed=bytes_accessed),
    )(toks, params_t["embedding3"], state0,
      params_t["wih_t"], params_t["whh_t"], params_t["b_lstm"],
      enc2_bsh, enc_bsd,
      params_t["outlin_t"], params_t["outlin_b"],
      params_t["out_t"], params_t["out_b"])

    h_f = state_f[:, 0:H]
    c_f = state_f[:, H:2 * H]
    ctx_f = state_f[:, 2 * H:2 * H + D2]
    return logits, (h_f[None], c_f[None]), ctx_f[None]


# ---------------------------- pure-JAX reference -----------------------------

def reference_step(params, encoder_outputs, hidden, output_tokens, prev_context):
    S, B, D2 = encoder_outputs.shape
    H = params["lstm_w_hh"].shape[1]
    h0, c0 = hidden
    embedded = jnp.take(params["embedding"], output_tokens, axis=0)
    x = jnp.concatenate([embedded, prev_context], axis=2)[0]
    gates = (x @ params["lstm_w_ih"].T + params["lstm_b_ih"]
             + h0[0] @ params["lstm_w_hh"].T + params["lstm_b_hh"])
    i = jax.nn.sigmoid(gates[:, 0:H])
    f = jax.nn.sigmoid(gates[:, H:2 * H])
    g = jnp.tanh(gates[:, 2 * H:3 * H])
    o = jax.nn.sigmoid(gates[:, 3 * H:4 * H])
    c1 = f * c0[0] + i * g
    h1 = o * jnp.tanh(c1)
    enc2 = encoder_outputs @ params["attn_w"].T + params["attn_b"]     # (S,B,H)
    scores = jnp.einsum("bh,sbh->bs", h1, enc2)
    w = jax.nn.softmax(scores, axis=1)
    ctx = jnp.einsum("bs,sbd->bd", w, encoder_outputs)
    out_final = jnp.tanh(
        jnp.concatenate([h1, ctx], axis=1) @ params["outlin_w"].T
        + params["outlin_b"])
    logits = out_final @ params["out_w"].T + params["out_b"]
    return logits[None], (h1[None], c1[None]), ctx[None]


def reference_decode(params, encoder_outputs, hidden, tokens, prev_context):
    h, c = hidden
    ctx = prev_context
    outs = []
    for t in range(tokens.shape[0]):
        logit, (h, c), ctx = reference_step(params, encoder_outputs, (h, c),
                                            tokens[t:t + 1], ctx)
        outs.append(logit[0])
    return jnp.stack(outs, axis=0), (h, c), ctx


# ------------------------------------ main -----------------------------------

if __name__ == "__main__":
    # small shapes: V multiple of 128 (lane-dense vocab tiles), 4H = 128 so the
    # packed [h|c|ctx] state slab is exactly one lane group.
    S, B, T = 8, 8, 4          # encoder length, batch, decode steps
    E, H = 32, 32              # embed_size, hidden_size
    V = 128                    # output_size (vocab)
    NUM_LAYERS = 1
    D2 = 2 * H                 # bidirectional encoder feature dim
    LSTM_IN = E + 2 * H        # embed + prev-context (attention + bidir)

    key = jax.random.PRNGKey(0)
    ks = jax.random.split(key, 16)

    def init(k, shape, scale=0.1):
        return (scale * jax.random.normal(k, shape)).astype(jnp.float32)

    params = {
        "embedding": init(ks[0], (V, E)),
        "lstm_w_ih": init(ks[1], (4 * H, LSTM_IN)),
        "lstm_w_hh": init(ks[2], (4 * H, H)),
        "lstm_b_ih": init(ks[3], (4 * H,)),
        "lstm_b_hh": init(ks[4], (4 * H,)),
        "attn_w":    init(ks[5], (H, D2)),        # attention_layer (general, bidir)
        "attn_b":    init(ks[6], (H,)),
        "outlin_w":  init(ks[7], (H, 3 * H)),     # output_linear (bidir -> 3H in)
        "outlin_b":  init(ks[8], (H,)),
        "out_w":     init(ks[9], (V, H)),         # out
        "out_b":     init(ks[10], (V,)),
    }

    encoder_outputs = init(ks[11], (S, B, D2), scale=1.0)
    hidden = (init(ks[12], (NUM_LAYERS, B, H), scale=1.0),
              init(ks[13], (NUM_LAYERS, B, H), scale=1.0))
    tokens = jax.random.randint(ks[14], (T, B), 0, V, dtype=jnp.int32)
    prev_context = init(ks[15], (1, B, D2), scale=1.0)

    # one-time prep (outside the per-token path)
    params_t = prepare_params(params)
    enc_bsd, enc2_bsh = jax.jit(prepare_encoder)(params_t, encoder_outputs)
    jax.block_until_ready((enc_bsd, enc2_bsh))

    # fused T-step decode (single pallas_call, resident weights, scratch state)
    decode_fn = jax.jit(decode_sequence)
    logits, (hT, cT), ctxT = decode_fn(params_t, enc_bsd, enc2_bsh, hidden,
                                       tokens, prev_context)
    jax.block_until_ready((logits, hT, cT, ctxT))

    ref_logits, (ref_h, ref_c), ref_ctx = reference_decode(
        params, encoder_outputs, hidden, tokens, prev_context)

    assert logits.shape == (T, B, V)
    assert hT.shape == (NUM_LAYERS, B, H)
    assert cT.shape == (NUM_LAYERS, B, H)
    assert ctxT.shape == (1, B, D2)
    assert jnp.allclose(logits, ref_logits, atol=5e-3, rtol=5e-3)
    assert jnp.allclose(hT, ref_h, atol=5e-3, rtol=5e-3)
    assert jnp.allclose(cT, ref_c, atol=5e-3, rtol=5e-3)
    assert jnp.allclose(ctxT, ref_ctx, atol=5e-3, rtol=5e-3)

    print("KERNEL_OK")
</pallas_src>

<mosaic_0001>
module attributes {stable_mosaic.version = 11 : i64} {
  func.func @_linear_kernel(%arg0: i32, %arg1: memref<64x64xf32, #tpu.memory_space<vmem>>, %arg2: memref<64x32xf32, #tpu.memory_space<vmem>>, %arg3: memref<1x32xf32, #tpu.memory_space<vmem>>, %arg4: memref<64x32xf32, #tpu.memory_space<vmem>>) attributes {dimension_semantics = [#tpu.dimension_semantics<parallel>], iteration_bounds = array<i64: 1>, scalar_prefetch = 0 : i64, scratch_operands = 0 : i64, tpu.core_type = #tpu.core_type<tc>, window_params = [{transform_indices = @transform_0, window_bounds = array<i64: 64, 64>}, {pipeline_mode = #tpu.pipeline_mode<synchronous>, transform_indices = @transform_1, window_bounds = array<i64: 64, 32>}, {pipeline_mode = #tpu.pipeline_mode<synchronous>, transform_indices = @transform_2, window_bounds = array<i64: 1, 32>}, {transform_indices = @transform_3, window_bounds = array<i64: 64, 32>}]} {
    %c0 = arith.constant 0 : index
    %c0_0 = arith.constant 0 : index
    %0 = vector.load %arg1[%c0, %c0_0] : memref<64x64xf32, #tpu.memory_space<vmem>>, vector<64x64xf32>
    %c0_1 = arith.constant 0 : index
    %c0_2 = arith.constant 0 : index
    %1 = vector.load %arg2[%c0_1, %c0_2] : memref<64x32xf32, #tpu.memory_space<vmem>>, vector<64x32xf32>
    %cst = arith.constant dense<0.000000e+00> : vector<64x32xf32>
    %2 = tpu.matmul %0, %1, %cst {dimension_numbers = #tpu.dot_dimension_numbers<[1], [0], [0], [1], [0, 0, 1, 1], [], []>} : vector<64x64xf32>, vector<64x32xf32>, vector<64x32xf32> -> vector<64x32xf32>
    %c0_3 = arith.constant 0 : index
    %c0_4 = arith.constant 0 : index
    %3 = vector.load %arg3[%c0_3, %c0_4] : memref<1x32xf32, #tpu.memory_space<vmem>>, vector<1x32xf32>
    %4 = vector.broadcast %3 : vector<1x32xf32> to vector<64x32xf32>
    %5 = arith.addf %2, %4 : vector<64x32xf32>
    %c0_5 = arith.constant 0 : index
    %c0_6 = arith.constant 0 : index
    %6 = vector.load %arg4[%c0_5, %c0_6] : memref<64x32xf32, #tpu.memory_space<vmem>>, vector<64x32xf32>
    tpu.vector_store %arg4[%c0_5, %c0_6], %5 {strides = array<i32>} : memref<64x32xf32, #tpu.memory_space<vmem>>, vector<64x32xf32>,
    return
  }
  func.func @transform_0(%arg0: i32) -> (i32, i32) {
    %c0_i32 = arith.constant 0 : i32
    %c0_i32_0 = arith.constant 0 : i32
    return %arg0, %c0_i32 : i32, i32
  }
  func.func @transform_1(%arg0: i32) -> (i32, i32) {
    %c0_i32 = arith.constant 0 : i32
    %c0_i32_0 = arith.constant 0 : i32
    %c0_i32_1 = arith.constant 0 : i32
    return %c0_i32, %c0_i32_0 : i32, i32
  }
  func.func @transform_2(%arg0: i32) -> (i32, i32) {
    %c0_i32 = arith.constant 0 : i32
    %c0_i32_0 = arith.constant 0 : i32
    %c0_i32_1 = arith.constant 0 : i32
    return %c0_i32, %c0_i32_0 : i32, i32
  }
  func.func @transform_3(%arg0: i32) -> (i32, i32) {
    %c0_i32 = arith.constant 0 : i32
    %c0_i32_0 = arith.constant 0 : i32
    return %arg0, %c0_i32 : i32, i32
  }
}

</mosaic_0001>

<bundles_post_ra>
// kernel: prepare_encoder.1
= control target key start
LH: loop header
LB: loop body
LE: loop exit
PB: predicated region body
PF: predicated region fallthrough
CT: control target
= control target key end

     0   :  { %vm38_vm0 = vcmask 523264   ;;  %s399_s0 = inlined_call_operand.vmem [shape: f32[64,64], index: 0, kind: input, shape index: {}]   ;;  %s400_s1 = inlined_call_operand.vmem [shape: f32[64,32], index: 1, kind: input, shape index: {}]   ;;  %s401_s2 = inlined_call_operand.vmem [shape: f32[1,32], index: 2, kind: input, shape index: {}]   ;;  %s402_s3 = inlined_call_operand.hbm [shape: f32[64,32], index: 3, kind: output, shape index: {}]  }
   0x1   :  { %v23_v0 = vld [vmem:[%s400_s1] sm:$0xff]  ;;  %v24_v1 = vld [vmem:[%s400_s1 + $0x8] sm:$0xff]  ;;  %v25_v2 = vld [vmem:[%s400_s1 + $0x10] sm:$0xff] }
   0x2   :  { %v246_v3 = vpack.c.bf16 %v24_v1, %v23_v0  ;;  %v26_v4 = vld [vmem:[%s400_s1 + $0x18] sm:$0xff]  ;;  %v27_v6 = vld [vmem:[%s400_s1 + $0x20] sm:$0xff]  ;;  %v28_v7 = vld [vmem:[%s400_s1 + $0x28] sm:$0xff] }
   0x3   :  { %v250_v5 = vpack.c.bf16 %v26_v4, %v25_v2  ;;  %v15_v8 = vld [vmem:[%s399_s0] sm:$0xff]  ;;  %v254_v10 = vpack.c.bf16 %v28_v7, %v27_v6 }
   0x4   :  { %247 = vmatprep.subr.bf16.mxu0 %v246_v3  ;;  %262 = vmatprep.subr.bf16.mxu1 %v246_v3  ;;  %v19_v9 = vld [vmem:[%s399_s0 + $0x20] sm:$0xff] }
   0x5   :  { %249 = vmatpush3.bf16.msra.mxu0 %v246_v3  ;;  %266 = vmatpush3.bf16.msra.mxu1 %v246_v3 }
   0x6   :  { %251 = vmatprep.subr.bf16.mxu0 %v250_v5  ;;  %263 = vmatprep.subr.bf16.mxu1 %v250_v5 }
   0x7   :  { %8 = vsyncpa [#allocation3], 0  ;;  %v29_v11 = vld [vmem:[%s400_s1 + $0x30] sm:$0xff]  ;;  %v30_v12 = vld [vmem:[%s400_s1 + $0x38] sm:$0xff]  ;;  %234 = vmatprep.mubr.msk.f32.mxu0 %vm38_vm0, %v15_v8  ;;  %240 = vmatprep.mubr.msk.f32.mxu1 %vm38_vm0, %v19_v9  ;;  %vm168_vm1 = vcmask 261120   ;;  %s297_s18 = smov [#allocation2]  }
   0x8   :  { %v258_v13 = vpack.c.bf16 %v30_v12, %v29_v11  ;;  %v16_v14 = vld [vmem:[%s399_s0 + $0x8] sm:$0xff]  ;;  %v17_v16 = vld [vmem:[%s399_s0 + $0x10] sm:$0xff]  ;;  %v18_v18 = vld [vmem:[%s399_s0 + $0x18] sm:$0xff]  ;;  %s182_s19 = sshll.u32 %s297_s18, 4  ;;  %s183_s19 = int_to_ptr.vmem [resolvable:$true] %s182_s19 }
   0x9   :  { %253 = vmatpush3.bf16.msra.mxu0 %v250_v5  ;;  %267 = vmatpush3.bf16.msra.mxu1 %v250_v5  ;;  %v20_v15 = vld [vmem:[%s399_s0 + $0x28] sm:$0xff]  ;;  %v21_v17 = vld [vmem:[%s399_s0 + $0x30] sm:$0xff]  ;;  %v22_v19 = vld [vmem:[%s399_s0 + $0x38] sm:$0xff]  ;;  %s273_s0 = scalar_lea.vmem %s183_s19, 1024  ;;  %p278_p1 = scmp.lt.s32.totalorder %s183_s19, %s183_s19 }
   0xa   :  { %255 = vmatprep.subr.bf16.mxu0 %v254_v10  ;;  %264 = vmatprep.subr.bf16.mxu1 %v254_v10  ;;  %v193_v20 = vld [vmem:[%s401_s2] ss:$0 sm:$0xff]  ;;  %p274_p0 = scmp.ne.s32.totalorder %s183_s19, %s273_s0  ;;  %p279_p2 = scmp.lt.s32.totalorder %s273_s0, %s273_s0 }
   0xc   :  { %p280_p3 = por %p279_p2, %p278_p1 }
   0xd   :  { %257 = vmatpush3.bf16.msra.mxu0 %v254_v10  ;;  %268 = vmatpush3.bf16.msra.mxu1 %v254_v10 }
   0xe   :  { %259 = vmatprep.subr.bf16.mxu0 %v258_v13  ;;  %265 = vmatprep.subr.bf16.mxu1 %v258_v13  ;;  %p281_p4 = pnand %p280_p3, %p274_p0 }
  0x11   :  { %261 = vmatpush3.bf16.msra.mxu0 %v258_v13  ;;  %269 = vmatpush3.bf16.msra.mxu1 %v258_v13 }
  0x14   :  { %235 = vmatmul.mubr.msk.f32.vlgmr.msra.gmra.mrb[0].mxu0 %vm38_vm0, %v16_v14  ;;  %241 = vmatmul.mubr.msk.f32.vlgmr.msra.gmra.mrb[0].mxu1 %vm38_vm0, %v20_v15 }
  0x15   :  { %237 = vmatprep.mubr.msk.f32.mxu0 %vm38_vm0, %v17_v16  ;;  %243 = vmatprep.mubr.msk.f32.mxu1 %vm38_vm0, %v21_v17 }
  0x18   :  { %238 = vmatmul.mubr.msk.f32.gmra.mrb[2].mxu0 %vm38_vm0, %v18_v18  ;;  %244 = vmatmul.mubr.msk.f32.gmra.mrb[2].mxu1 %vm38_vm0, %v22_v19 }
  0xe7   :  { %v236_v21 = vpop.f32.mrb[0].mxu0  ;;  %v242_v22 = vpop.f32.mrb[0].mxu1 }
  0xe8   :  { %v135_v23 = vadd.f32 %v236_v21, %v193_v20  ;;  %v155_v24 = vadd.f32 %v242_v22, %v193_v20  ;;  %v129_v25 = vpop.f32.mrb[1].mxu0  ;;  %v149_v26 = vpop.f32.mrb[1].mxu1 }
  0xe9   :  { %v130_v27 = vadd.f32 %v193_v20, %v129_v25  ;;  %v150_v28 = vadd.f32 %v193_v20, %v149_v26 }
  0xea   :  { %170 = vst.msk [vmem:[#allocation2 + $0x8] sm:$0xff] %vm168_vm1, %v135_v23  ;;  %174 = vst.msk [vmem:[#allocation2 + $0x28] sm:$0xff] %vm168_vm1, %v155_v24 }
  0xeb   :  { %169 = vst.msk [vmem:[#allocation2] sm:$0xff] %vm168_vm1, %v130_v27  ;;  %173 = vst.msk [vmem:[#allocation2 + $0x20] sm:$0xff] %vm168_vm1, %v150_v28  ;;  %v239_v29 = vpop.f32.mrb[2].mxu0  ;;  %v245_v30 = vpop.f32.mrb[2].mxu1 }
  0xec   :  { %v145_v31 = vadd.f32 %v239_v29, %v193_v20  ;;  %v165_v32 = vadd.f32 %v245_v30, %v193_v20  ;;  %v139_v33 = vpop.f32.mrb[3].mxu0  ;;  %v159_v34 = vpop.f32.mrb[3].mxu1 }
  0xed   :  { %v140_v35 = vadd.f32 %v193_v20, %v139_v33  ;;  %v160_v36 = vadd.f32 %v193_v20, %v159_v34 }
  0xee   :  { %172 = vst.msk [vmem:[#allocation2 + $0x18] sm:$0xff] %vm168_vm1, %v145_v31  ;;  %176 = vst.msk [vmem:[#allocation2 + $0x38] sm:$0xff] %vm168_vm1, %v165_v32 }
  0xef   :  { %171 = vst.msk [vmem:[#allocation2 + $0x10] sm:$0xff] %vm168_vm1, %v140_v35  ;;  %175 = vst.msk [vmem:[#allocation2 + $0x30] sm:$0xff] %vm168_vm1, %v160_v36 }
  0xf0   :  { %284 = shalt.err (!%p281_p4)
}
  0xf1   :  { %s285_s21 = scalar_lea.hbm %s402_s3, 1024 }
  0xf2   :  { %p286_p5 = scmp.ne.s32.totalorder %s402_s3, %s285_s21  ;;  %p289_p6 = scmp.lt.u32.totalorder %s285_s21, %s402_s3 }
  0xf4   :  { %p291_p7 = pnand %p289_p6, %p286_p5 }
  0xf6   :  { %294 = shalt.err (!%p291_p7)
}
  0xf7   :  { %s298_s26 = smov 128   ;;  %s299_s27 = smov 8  }
  0xf8   :  { %188 = dma.vmem_to_hbm [thread:$0]  %s183_s19, 1024, %s402_s3, [#allocation3], %s298_s26, %s298_s26, %s299_s27  }
  0xf9   :  { %295 = dma.done.wait [#allocation3], 1024  }
  0xfa   :  { %296 = vsyncadd [#allocation3], 4294966272 }
  0xfb   :  { %192 = vsyncpa [#allocation3], 1 }

</bundles_post_ra>
